<compile_context>
chip_gen: v7x
topology: tpu7x:2x2x1
jax: 0.10.0
libtpu: 0.0.40
codegen_flags: <defaults>
</compile_context>

<pallas_src>
import functools

import jax
import jax.numpy as jnp
import numpy as np
from jax.experimental import pallas as pl
from jax.experimental.pallas import tpu as pltpu

STATE_DIM = 3            # Pendulum-v1 observation dim
H1, H2, H3 = 256, 256, 128


def _round_up(n, m):
    return ((n + m - 1) // m) * m


def _critic_kernel(x_ref,
                   w1_ref, b1_ref,
                   w2_ref, b2_ref,
                   w3_ref, b3_ref,
                   w4_ref, b4_ref,
                   out_ref):
    x = x_ref[...].astype(jnp.float32)                # (TB, S) f32
    s_dim = x_ref.shape[1]

    # fc1 + relu (S -> 256): S lane-broadcast FMAs on the VPU.  S is tiny (3),
    # so we skip the degenerate K=S MXU matmul; b1 is folded into the init.
    w1 = w1_ref[...]                                   # (S, 256) f32
    h = b1_ref[...] + x[:, 0:1] * w1[0:1, :]
    for s in range(1, s_dim):
        h = h + x[:, s:s + 1] * w1[s:s + 1, :]
    h = jnp.maximum(h, 0.0)

    # fc2 + relu (256 -> 256): bf16 operands to the MXU, f32 accumulation.
    w2 = w2_ref[...]
    h = jnp.dot(h.astype(w2.dtype), w2,
                preferred_element_type=jnp.float32) + b2_ref[...]
    h = jnp.maximum(h, 0.0)

    # fc3 + relu (256 -> 128)
    w3 = w3_ref[...]
    h = jnp.dot(h.astype(w3.dtype), w3,
                preferred_element_type=jnp.float32) + b3_ref[...]
    h = jnp.maximum(h, 0.0)

    # fc4 (128 -> 1): VPU multiply + lane reduction (f32), no N=1 MXU matmul.
    v = jnp.sum(h * w4_ref[...], axis=-1, keepdims=True) + b4_ref[...]
    out_ref[...] = v.astype(out_ref.dtype)             # (TB, 1) block store


def init_params(key, state_dim=STATE_DIM):
    """Deterministic init mimicking nn.Linear default (U[-1/sqrt(fan_in), +])."""
    dims = [(state_dim, H1), (H1, H2), (H2, H3), (H3, 1)]
    params = []
    for fan_in, fan_out in dims:
        key, kw, kb = jax.random.split(key, 3)
        bound = 1.0 / np.sqrt(fan_in)
        w = jax.random.uniform(kw, (fan_in, fan_out), jnp.float32, -bound, bound)
        b = jax.random.uniform(kb, (1, fan_out), jnp.float32, -bound, bound)
        params.append((w, b))
    return params


def prepare_params(params, matmul_dtype=jnp.bfloat16):
    """Pack params into kernel layout.

    W2/W3 (the large matmul weights) are stored in `matmul_dtype` (bf16 by
    default: halves their HBM/DMA bytes and keeps the MXU on its fast bf16
    path).  W1, W4 and all biases stay f32 (they feed VPU math only).  Pass
    matmul_dtype=jnp.float32 to recover bit-exact f32 semantics end to end.
    """
    (w1, b1), (w2, b2), (w3, b3), (w4, b4) = params
    return (w1.astype(jnp.float32), b1.astype(jnp.float32),          # (S,256),(1,256)
            w2.astype(matmul_dtype), b2.astype(jnp.float32),         # (256,256),(1,256)
            w3.astype(matmul_dtype), b3.astype(jnp.float32),         # (256,128),(1,128)
            w4.astype(jnp.float32).reshape(1, H3),                   # (1,128) row
            b4.astype(jnp.float32))                                  # (1,1)


def _pick_block_batch(batch, block_batch):
    """Batch-tile size; guarantees >= 2 grid steps for batch >= 128 (v7x megacore)."""
    tb_full = _round_up(batch, 8)
    if batch >= 128 and tb_full <= block_batch:
        return _round_up(pl.cdiv(batch, 2), 8)
    return min(block_batch, tb_full)


@functools.partial(jax.jit, static_argnames=("block_batch",))
def critic_forward(x, prepped, block_batch=1024):
    """x: (batch, state_dim) float32. Returns (batch, 1) float32 values."""
    w1, b1, w2, b2, w3, b3, w4t, b4 = prepped
    batch, state_dim = x.shape
    assert block_batch % 8 == 0 and block_batch >= 8
    x = x.astype(jnp.float32)

    tb = _pick_block_batch(batch, block_batch)
    # Ragged last block is handled by Pallas: OOB input rows are padded, OOB
    # output rows are dropped on writeback.
    n_blocks = pl.cdiv(batch, tb)

    # Weights/biases: constant index_map -> VMEM-resident across grid steps.
    def resident(a):
        return pl.BlockSpec(a.shape, lambda i: (0,) * a.ndim)

    grid_spec = pltpu.PrefetchScalarGridSpec(
        num_scalar_prefetch=0,
        grid=(n_blocks,),
        in_specs=[
            pl.BlockSpec((tb, state_dim), lambda i: (i, 0)),   # x tile
            resident(w1), resident(b1),
            resident(w2), resident(b2),
            resident(w3), resident(b3),
            resident(w4t), resident(b4),
        ],
        out_specs=pl.BlockSpec((tb, 1), lambda i: (i, 0)),
    )

    flops = 2 * batch * (state_dim * H1 + H1 * H2 + H2 * H3 + H3)
    bytes_accessed = (
        x.size * x.dtype.itemsize
        + sum(int(a.size) * a.dtype.itemsize
              for a in (w1, b1, w2, b2, w3, b3, w4t, b4))
        + batch * 4)                                  # (batch, 1) f32 output

    return pl.pallas_call(
        _critic_kernel,
        out_shape=jax.ShapeDtypeStruct((batch, 1), jnp.float32),
        grid_spec=grid_spec,
        compiler_params=pltpu.CompilerParams(
            dimension_semantics=("parallel",)),
        cost_estimate=pl.CostEstimate(
            flops=flops, transcendentals=0, bytes_accessed=bytes_accessed),
    )(x, w1, b1, w2, b2, w3, b3, w4t, b4)


def _reference_forward(x, params, matmul_dtype=jnp.bfloat16):
    """Pure-JAX reference mirroring the kernel's weight/activation quantization."""
    (w1, b1), (w2, b2), (w3, b3), (w4, b4) = params
    h = x.astype(jnp.float32)
    h = jnp.maximum(h @ w1 + b1, 0.0)
    h = jnp.maximum(jnp.dot(h.astype(matmul_dtype), w2.astype(matmul_dtype),
                            preferred_element_type=jnp.float32) + b2, 0.0)
    h = jnp.maximum(jnp.dot(h.astype(matmul_dtype), w3.astype(matmul_dtype),
                            preferred_element_type=jnp.float32) + b3, 0.0)
    return h @ w4 + b4


if __name__ == "__main__":
    key = jax.random.PRNGKey(0)
    key, kx = jax.random.split(key)

    params = init_params(key)
    prepped = prepare_params(params)

    # Small, single-tile case (per-step RL usage).
    batch = 8
    x = jax.random.normal(kx, (batch, STATE_DIM), jnp.float32)
    value = jax.block_until_ready(critic_forward(x, prepped))
    ref = _reference_forward(x, params)
    np.testing.assert_allclose(np.asarray(value), np.asarray(ref),
                               rtol=2e-3, atol=2e-3)
    assert value.shape == (batch, 1)

    # Multi-tile + ragged last block (grid = cdiv(200, 64) = 4, partial tail).
    key, kx2 = jax.random.split(key)
    batch2 = 200
    x2 = jax.random.normal(kx2, (batch2, STATE_DIM), jnp.float32)
    value2 = jax.block_until_ready(critic_forward(x2, prepped, block_batch=64))
    ref2 = _reference_forward(x2, params)
    np.testing.assert_allclose(np.asarray(value2), np.asarray(ref2),
                               rtol=2e-3, atol=2e-3)
    assert value2.shape == (batch2, 1)

    # Two-block split path (batch >= 128 with default block_batch -> 2 grid
    # steps so both v7x TensorCores get work; last block ragged).
    key, kx3 = jax.random.split(key)
    batch3 = 136
    x3 = jax.random.normal(kx3, (batch3, STATE_DIM), jnp.float32)
    value3 = jax.block_until_ready(critic_forward(x3, prepped))
    ref3 = _reference_forward(x3, params)
    np.testing.assert_allclose(np.asarray(value3), np.asarray(ref3),
                               rtol=2e-3, atol=2e-3)
    assert value3.shape == (batch3, 1)

    print("KERNEL_OK")
</pallas_src>

<mosaic_0001>
module attributes {stable_mosaic.version = 11 : i64} {
  func.func @_critic_kernel(%arg0: i32, %arg1: memref<8x3xf32, #tpu.memory_space<vmem>>, %arg2: memref<3x256xf32, #tpu.memory_space<vmem>>, %arg3: memref<1x256xf32, #tpu.memory_space<vmem>>, %arg4: memref<256x256xbf16, #tpu.memory_space<vmem>>, %arg5: memref<1x256xf32, #tpu.memory_space<vmem>>, %arg6: memref<256x128xbf16, #tpu.memory_space<vmem>>, %arg7: memref<1x128xf32, #tpu.memory_space<vmem>>, %arg8: memref<1x128xf32, #tpu.memory_space<vmem>>, %arg9: memref<1x1xf32, #tpu.memory_space<vmem>>, %arg10: memref<8x1xf32, #tpu.memory_space<vmem>>) attributes {dimension_semantics = [#tpu.dimension_semantics<parallel>], iteration_bounds = array<i64: 1>, scalar_prefetch = 0 : i64, scratch_operands = 0 : i64, tpu.core_type = #tpu.core_type<tc>, window_params = [{transform_indices = @transform_0, window_bounds = array<i64: 8, 3>}, {pipeline_mode = #tpu.pipeline_mode<synchronous>, transform_indices = @transform_1, window_bounds = array<i64: 3, 256>}, {pipeline_mode = #tpu.pipeline_mode<synchronous>, transform_indices = @transform_2, window_bounds = array<i64: 1, 256>}, {pipeline_mode = #tpu.pipeline_mode<synchronous>, transform_indices = @transform_3, window_bounds = array<i64: 256, 256>}, {pipeline_mode = #tpu.pipeline_mode<synchronous>, transform_indices = @transform_4, window_bounds = array<i64: 1, 256>}, {pipeline_mode = #tpu.pipeline_mode<synchronous>, transform_indices = @transform_5, window_bounds = array<i64: 256, 128>}, {pipeline_mode = #tpu.pipeline_mode<synchronous>, transform_indices = @transform_6, window_bounds = array<i64: 1, 128>}, {pipeline_mode = #tpu.pipeline_mode<synchronous>, transform_indices = @transform_7, window_bounds = array<i64: 1, 128>}, {pipeline_mode = #tpu.pipeline_mode<synchronous>, transform_indices = @transform_8, window_bounds = array<i64: 1, 1>}, {transform_indices = @transform_9, window_bounds = array<i64: 8, 1>}]} {
    %c0 = arith.constant 0 : index
    %c0_0 = arith.constant 0 : index
    %0 = vector.load %arg1[%c0, %c0_0] : memref<8x3xf32, #tpu.memory_space<vmem>>, vector<8x3xf32>
    %c0_1 = arith.constant 0 : index
    %c0_2 = arith.constant 0 : index
    %1 = vector.load %arg2[%c0_1, %c0_2] : memref<3x256xf32, #tpu.memory_space<vmem>>, vector<3x256xf32>
    %c0_3 = arith.constant 0 : index
    %c0_4 = arith.constant 0 : index
    %2 = vector.load %arg3[%c0_3, %c0_4] : memref<1x256xf32, #tpu.memory_space<vmem>>, vector<1x256xf32>
    %3 = vector.extract_strided_slice %0 {offsets = [0, 0], sizes = [8, 1], strides = [1, 1]} : vector<8x3xf32> to vector<8x1xf32>
    %4 = vector.extract_strided_slice %1 {offsets = [0, 0], sizes = [1, 256], strides = [1, 1]} : vector<3x256xf32> to vector<1x256xf32>
    %5 = vector.broadcast %3 : vector<8x1xf32> to vector<8x256xf32>
    %6 = vector.broadcast %4 : vector<1x256xf32> to vector<8x256xf32>
    %7 = arith.mulf %5, %6 : vector<8x256xf32>
    %8 = vector.broadcast %2 : vector<1x256xf32> to vector<8x256xf32>
    %9 = arith.addf %8, %7 : vector<8x256xf32>
    %10 = vector.extract_strided_slice %0 {offsets = [0, 1], sizes = [8, 1], strides = [1, 1]} : vector<8x3xf32> to vector<8x1xf32>
    %11 = vector.extract_strided_slice %1 {offsets = [1, 0], sizes = [1, 256], strides = [1, 1]} : vector<3x256xf32> to vector<1x256xf32>
    %12 = vector.broadcast %10 : vector<8x1xf32> to vector<8x256xf32>
    %13 = vector.broadcast %11 : vector<1x256xf32> to vector<8x256xf32>
    %14 = arith.mulf %12, %13 : vector<8x256xf32>
    %15 = arith.addf %9, %14 : vector<8x256xf32>
    %16 = vector.extract_strided_slice %0 {offsets = [0, 2], sizes = [8, 1], strides = [1, 1]} : vector<8x3xf32> to vector<8x1xf32>
    %17 = vector.extract_strided_slice %1 {offsets = [2, 0], sizes = [1, 256], strides = [1, 1]} : vector<3x256xf32> to vector<1x256xf32>
    %18 = vector.broadcast %16 : vector<8x1xf32> to vector<8x256xf32>
    %19 = vector.broadcast %17 : vector<1x256xf32> to vector<8x256xf32>
    %20 = arith.mulf %18, %19 : vector<8x256xf32>
    %21 = arith.addf %15, %20 : vector<8x256xf32>
    %cst = arith.constant 0.000000e+00 : f32
    %22 = vector.broadcast %cst : f32 to vector<8x256xf32>
    %23 = arith.maximumf %21, %22 : vector<8x256xf32>
    %c0_5 = arith.constant 0 : index
    %c0_6 = arith.constant 0 : index
    %24 = vector.load %arg4[%c0_5, %c0_6] : memref<256x256xbf16, #tpu.memory_space<vmem>>, vector<256x256xbf16>
    %25 = arith.truncf %23 : vector<8x256xf32> to vector<8x256xbf16>
    %cst_7 = arith.constant dense<0.000000e+00> : vector<8x256xf32>
    %26 = tpu.matmul %25, %24, %cst_7 {dimension_numbers = #tpu.dot_dimension_numbers<[1], [0], [0], [1], [0, 0, 1, 1], [], []>} : vector<8x256xbf16>, vector<256x256xbf16>, vector<8x256xf32> -> vector<8x256xf32>
    %c0_8 = arith.constant 0 : index
    %c0_9 = arith.constant 0 : index
    %27 = vector.load %arg5[%c0_8, %c0_9] : memref<1x256xf32, #tpu.memory_space<vmem>>, vector<1x256xf32>
    %28 = vector.broadcast %27 : vector<1x256xf32> to vector<8x256xf32>
    %29 = arith.addf %26, %28 : vector<8x256xf32>
    %cst_10 = arith.constant 0.000000e+00 : f32
    %30 = vector.broadcast %cst_10 : f32 to vector<8x256xf32>
    %31 = arith.maximumf %29, %30 : vector<8x256xf32>
    %c0_11 = arith.constant 0 : index
    %c0_12 = arith.constant 0 : index
    %32 = vector.load %arg6[%c0_11, %c0_12] : memref<256x128xbf16, #tpu.memory_space<vmem>>, vector<256x128xbf16>
    %33 = arith.truncf %31 : vector<8x256xf32> to vector<8x256xbf16>
    %cst_13 = arith.constant dense<0.000000e+00> : vector<8x128xf32>
    %34 = tpu.matmul %33, %32, %cst_13 {dimension_numbers = #tpu.dot_dimension_numbers<[1], [0], [0], [1], [0, 0, 1, 1], [], []>} : vector<8x256xbf16>, vector<256x128xbf16>, vector<8x128xf32> -> vector<8x128xf32>
    %c0_14 = arith.constant 0 : index
    %c0_15 = arith.constant 0 : index
    %35 = vector.load %arg7[%c0_14, %c0_15] : memref<1x128xf32, #tpu.memory_space<vmem>>, vector<1x128xf32>
    %36 = vector.broadcast %35 : vector<1x128xf32> to vector<8x128xf32>
    %37 = arith.addf %34, %36 : vector<8x128xf32>
    %cst_16 = arith.constant 0.000000e+00 : f32
    %38 = vector.broadcast %cst_16 : f32 to vector<8x128xf32>
    %39 = arith.maximumf %37, %38 : vector<8x128xf32>
    %c0_17 = arith.constant 0 : index
    %c0_18 = arith.constant 0 : index
    %40 = vector.load %arg8[%c0_17, %c0_18] : memref<1x128xf32, #tpu.memory_space<vmem>>, vector<1x128xf32>
    %41 = vector.broadcast %40 : vector<1x128xf32> to vector<8x128xf32>
    %42 = arith.mulf %39, %41 : vector<8x128xf32>
    %cst_19 = arith.constant dense<0.000000e+00> : vector<8xf32>
    %43 = vector.multi_reduction <add>, %42, %cst_19 [1] : vector<8x128xf32> to vector<8xf32>
    %44 = vector.shape_cast %43 : vector<8xf32> to vector<8x1xf32>
    %c0_20 = arith.constant 0 : index
    %c0_21 = arith.constant 0 : index
    %45 = vector.load %arg9[%c0_20, %c0_21] : memref<1x1xf32, #tpu.memory_space<vmem>>, vector<1x1xf32>
    %46 = vector.broadcast %45 : vector<1x1xf32> to vector<8x1xf32>
    %47 = arith.addf %44, %46 : vector<8x1xf32>
    %c0_22 = arith.constant 0 : index
    %c0_23 = arith.constant 0 : index
    %48 = vector.load %arg10[%c0_22, %c0_23] : memref<8x1xf32, #tpu.memory_space<vmem>>, vector<8x1xf32>
    tpu.vector_store %arg10[%c0_22, %c0_23], %47 {strides = array<i32>} : memref<8x1xf32, #tpu.memory_space<vmem>>, vector<8x1xf32>,
    return
  }
  func.func @transform_0(%arg0: i32) -> (i32, i32) {
    %c0_i32 = arith.constant 0 : i32
    %c0_i32_0 = arith.constant 0 : i32
    return %arg0, %c0_i32 : i32, i32
  }
  func.func @transform_1(%arg0: i32) -> (i32, i32) {
    %c0_i32 = arith.constant 0 : i32
    %c0_i32_0 = arith.constant 0 : i32
    %c0_i32_1 = arith.constant 0 : i32
    return %c0_i32, %c0_i32_0 : i32, i32
  }
  func.func @transform_2(%arg0: i32) -> (i32, i32) {
    %c0_i32 = arith.constant 0 : i32
    %c0_i32_0 = arith.constant 0 : i32
    %c0_i32_1 = arith.constant 0 : i32
    return %c0_i32, %c0_i32_0 : i32, i32
  }
  func.func @transform_3(%arg0: i32) -> (i32, i32) {
    %c0_i32 = arith.constant 0 : i32
    %c0_i32_0 = arith.constant 0 : i32
    %c0_i32_1 = arith.constant 0 : i32
    return %c0_i32, %c0_i32_0 : i32, i32
  }
  func.func @transform_4(%arg0: i32) -> (i32, i32) {
    %c0_i32 = arith.constant 0 : i32
    %c0_i32_0 = arith.constant 0 : i32
    %c0_i32_1 = arith.constant 0 : i32
    return %c0_i32, %c0_i32_0 : i32, i32
  }
  func.func @transform_5(%arg0: i32) -> (i32, i32) {
    %c0_i32 = arith.constant 0 : i32
    %c0_i32_0 = arith.constant 0 : i32
    %c0_i32_1 = arith.constant 0 : i32
    return %c0_i32, %c0_i32_0 : i32, i32
  }
  func.func @transform_6(%arg0: i32) -> (i32, i32) {
    %c0_i32 = arith.constant 0 : i32
    %c0_i32_0 = arith.constant 0 : i32
    %c0_i32_1 = arith.constant 0 : i32
    return %c0_i32, %c0_i32_0 : i32, i32
  }
  func.func @transform_7(%arg0: i32) -> (i32, i32) {
    %c0_i32 = arith.constant 0 : i32
    %c0_i32_0 = arith.constant 0 : i32
    %c0_i32_1 = arith.constant 0 : i32
    return %c0_i32, %c0_i32_0 : i32, i32
  }
  func.func @transform_8(%arg0: i32) -> (i32, i32) {
    %c0_i32 = arith.constant 0 : i32
    %c0_i32_0 = arith.constant 0 : i32
    %c0_i32_1 = arith.constant 0 : i32
    return %c0_i32, %c0_i32_0 : i32, i32
  }
  func.func @transform_9(%arg0: i32) -> (i32, i32) {
    %c0_i32 = arith.constant 0 : i32
    %c0_i32_0 = arith.constant 0 : i32
    return %arg0, %c0_i32 : i32, i32
  }
}

</mosaic_0001>

<bundles_post_ra>
// kernel: critic_forward.1
= control target key start
LH: loop header
LB: loop body
LE: loop exit
PB: predicated region body
PF: predicated region fallthrough
CT: control target
= control target key end

     0   :  { %s917_s0 = inlined_call_operand.vmem [shape: f32[8,3], index: 0, kind: input, shape index: {}]   ;;  %s918_s1 = inlined_call_operand.vmem [shape: f32[3,256], index: 1, kind: input, shape index: {}]   ;;  %s919_s2 = inlined_call_operand.vmem [shape: f32[1,256], index: 2, kind: input, shape index: {}]   ;;  %s920_s3 = inlined_call_operand.hbm [shape: bf16[256,256], index: 3, kind: input, shape index: {}]   ;;  %s921_s4 = inlined_call_operand.vmem [shape: f32[1,256], index: 4, kind: input, shape index: {}]   ;;  %s922_s5 = inlined_call_operand.hbm [shape: bf16[256,128], index: 5, kind: input, shape index: {}]   ;;  %s923_s6 = inlined_call_operand.vmem [shape: f32[1,128], index: 6, kind: input, shape index: {}]   ;;  %s924_s7 = inlined_call_operand.vmem [shape: f32[1,128], index: 7, kind: input, shape index: {}]   ;;  %s925_s8 = inlined_call_operand.<no memory space> [shape: f32[1,1], index: 8, kind: input, shape index: {}]   ;;  %s926_s9 = inlined_call_operand.vmem [shape: f32[8,1], index: 9, kind: output, shape index: {}]  }
   0x1   :  { %v14_v0 = vstv %s925_s8 }
   0x2   :  { %15 = vst [vmem:[#allocation2] sm:$0x1] %v14_v0 }
   0x3   :  { %16 = vsyncpa [#allocation4], 0 }
   0x4   :  { %17 = vsyncpa [#allocation6], 0  ;;  %s810_s11 = smov [#allocation3]   ;;  %s762_s15 = scalar_lea.hbm %s920_s3, 4096 }
   0x5   :  { %s29_s12 = sshll.u32 %s810_s11, 4  ;;  %p763_p0 = scmp.ne.s32.totalorder %s920_s3, %s762_s15  ;;  %s30_s12 = int_to_ptr.vmem [resolvable:$true] %s29_s12 }
   0x6   :  { %p766_p1 = scmp.lt.u32.totalorder %s762_s15, %s920_s3 }
   0x8   :  { %p768_p2 = pnand %p766_p1, %p763_p0 }
   0xa   :  { %771 = shalt.err (!%p768_p2)
}
   0xb   :  { %s772_s8 = scalar_lea.vmem %s30_s12, 4096  ;;  %p777_p4 = scmp.lt.s32.totalorder %s30_s12, %s30_s12 }
   0xc   :  { %p773_p3 = scmp.ne.s32.totalorder %s30_s12, %s772_s8  ;;  %p778_p5 = scmp.lt.s32.totalorder %s772_s8, %s772_s8 }
   0xe   :  { %p779_p6 = por %p778_p5, %p777_p4 }
  0x10   :  { %p780_p7 = pnand %p779_p6, %p773_p3 }
  0x12   :  { %783 = shalt.err (!%p780_p7)
}
  0x13   :  { %s811_s20 = smov 128   ;;  %s812_s21 = smov 8  }
  0x14   :  { %35 = dma.hbm_to_vmem [thread:$0]  %s920_s3, 4096, %s30_s12, [#allocation4], %s811_s20, %s811_s20, %s812_s21  }
  0x15   :  { %s813_s24 = smov [#allocation5]   ;;  %s784_s28 = scalar_lea.hbm %s922_s5, 2048 }
  0x16   :  { %s43_s25 = sshll.u32 %s813_s24, 4  ;;  %p785_p8 = scmp.ne.s32.totalorder %s922_s5, %s784_s28  ;;  %s44_s25 = int_to_ptr.vmem [resolvable:$true] %s43_s25 }
  0x17   :  { %p788_p9 = scmp.lt.u32.totalorder %s784_s28, %s922_s5 }
  0x19   :  { %p790_p10 = pnand %p788_p9, %p785_p8 }
  0x1b   :  { %793 = shalt.err (!%p790_p10)
}
  0x1c   :  { %s794_s13 = scalar_lea.vmem %s44_s25, 2048  ;;  %p799_p12 = scmp.lt.s32.totalorder %s44_s25, %s44_s25 }
  0x1d   :  { %p795_p11 = scmp.ne.s32.totalorder %s44_s25, %s794_s13  ;;  %p800_p13 = scmp.lt.s32.totalorder %s794_s13, %s794_s13 }
  0x1f   :  { %p801_p0 = por %p800_p13, %p799_p12 }
  0x21   :  { %p802_p1 = pnand %p801_p0, %p795_p11 }
  0x23   :  { %805 = shalt.err (!%p802_p1)
}
  0x24   :  { %s814_s3 = smov 64   ;;  %s815_s12 = smov 4  }
  0x25   :  { %49 = dma.hbm_to_vmem [thread:$0]  %s922_s5, 2048, %s44_s25, [#allocation6], %s814_s3, %s814_s3, %s815_s12  }
  0x26   :  { %806 = dma.done.wait [#allocation4], 4096  }
  0x27   :  { %807 = vsyncadd [#allocation4], 4294963200 }
  0x28   :  { %808 = dma.done.wait [#allocation6], 2048  }
  0x29   :  { %809 = vsyncadd [#allocation6], 4294965248  ;;  %v816_v1 = vmov 0   ;;  %v817_v2 = vmov 2   ;;  %v63_v3 = vld [vmem:[%s917_s0] sm:$0xff]  ;;  %v818_v8 = vmov 1   ;;  %v72_v49 = vlaneseq }
  0x2a   :  { %694 = vset.pattern.permute.xlu0 %v816_v1  ;;  %696 = vset.pattern.permute.xlu1 %v817_v2  ;;  %v698_v4 = vld [vmem:[#allocation3 + $0x4] ss:$8 sps:$4 sm:$0xff]   ;;  %v700_v5 = vld [vmem:[#allocation3] ss:$8 sps:$4 sm:$0xff]   ;;  %v701_v6 = vld [vmem:[#allocation3 + $0x14] ss:$8 sps:$4 sm:$0xff]  }
  0x2b   :  { %68 = vperm.xlu0 %694, %v63_v3   ;;  %132 = vperm.xlu1 %696, %v63_v3   ;;  %v703_v7 = vld [vmem:[#allocation3 + $0x10] ss:$8 sps:$4 sm:$0xff]   ;;  %v704_v9 = vld [vmem:[#allocation3 + $0x24] ss:$8 sps:$4 sm:$0xff]   ;;  %v706_v10 = vld [vmem:[#allocation3 + $0x20] ss:$8 sps:$4 sm:$0xff]  }
  0x2c   :  { %365 = vmatprep.subr.bf16.mxu0 %v698_v4  ;;  %v707_v11 = vld [vmem:[#allocation3 + $0x34] ss:$8 sps:$4 sm:$0xff]   ;;  %v709_v12 = vld [vmem:[#allocation3 + $0x30] ss:$8 sps:$4 sm:$0xff]   ;;  %v710_v13 = vld [vmem:[#allocation3 + $0x44] ss:$8 sps:$4 sm:$0xff]  }
  0x2d   :  { %366 = vmatpush1.bf16.msra.mxu0 %v700_v5  ;;  %v712_v14 = vld [vmem:[#allocation3 + $0x40] ss:$8 sps:$4 sm:$0xff]   ;;  %v713_v15 = vld [vmem:[#allocation3 + $0x54] ss:$8 sps:$4 sm:$0xff]   ;;  %v715_v16 = vld [vmem:[#allocation3 + $0x50] ss:$8 sps:$4 sm:$0xff]  }
  0x2e   :  { %367 = vmatprep.subr.bf16.mxu0 %v701_v6  ;;  %v716_v17 = vld [vmem:[#allocation3 + $0x64] ss:$8 sps:$4 sm:$0xff]   ;;  %v718_v18 = vld [vmem:[#allocation3 + $0x60] ss:$8 sps:$4 sm:$0xff]   ;;  %v719_v19 = vld [vmem:[#allocation3 + $0x74] ss:$8 sps:$4 sm:$0xff]  }
  0x2f   :  { %695 = vset.pattern.permute.xlu0 %v818_v8  ;;  %v746_v20 = vld [vmem:[#allocation5 + $0x40] sm:$0xff]   ;;  %v748_v22 = vld [vmem:[#allocation5 + $0x48] sm:$0xff]   ;;  %v750_v24 = vld [vmem:[#allocation5 + $0x50] sm:$0xff]   ;;  %v73_v50 = vshrl.u32 %v72_v49, 7  ;;  %vm604_vm0 = vcmask 7168  }
  0x30   :  { %106 = vperm.xlu0 %695, %v63_v3   ;;  %v747_v21 = vld [vmem:[#allocation5] sm:$0xff]   ;;  %663 = vmatprep.subr.bf16.mxu1 %v746_v20  ;;  %v749_v23 = vld [vmem:[#allocation5 + $0x8] sm:$0xff]   ;;  %v721_v25 = vld [vmem:[#allocation3 + $0x70] ss:$8 sps:$4 sm:$0xff]  }
  0x31   :  { %368 = vmatpush1.bf16.msra.mxu0 %v703_v7  ;;  %664 = vmatpush3.bf16.msra.mxu1 %v747_v21  ;;  %v722_v26 = vld [vmem:[#allocation3 + $0x84] ss:$8 sps:$4 sm:$0xff]   ;;  %v751_v27 = vld [vmem:[#allocation5 + $0x10] sm:$0xff]   ;;  %v752_v28 = vld [vmem:[#allocation5 + $0x58] sm:$0xff]   ;;  %v74_v51 = vsub.s32 0, %v73_v50  ;;  %v78_v52 = vsub.s32 4, %v73_v50 }
  0x32   :  { %369 = vmatprep.subr.bf16.mxu0 %v704_v9  ;;  %665 = vmatprep.subr.bf16.mxu1 %v748_v22  ;;  %v724_v29 = vld [vmem:[#allocation3 + $0x80] ss:$8 sps:$4 sm:$0xff]   ;;  %v725_v30 = vld [vmem:[#allocation3 + $0x94] ss:$8 sps:$4 sm:$0xff]   ;;  %v727_v31 = vld [vmem:[#allocation3 + $0x90] ss:$8 sps:$4 sm:$0xff]  }
  0x33   :  { %v753_v32 = vld [vmem:[#allocation5 + $0x18] sm:$0xff]   ;;  %v754_v33 = vld [vmem:[#allocation5 + $0x60] sm:$0xff]   ;;  %v756_v36 = vld [vmem:[#allocation5 + $0x68] sm:$0xff]   ;;  %v137_v54 = vsub.s32 2, %v73_v50  ;;  %v141_v55 = vsub.s32 6, %v73_v50  ;;  %v99_v58 = vsub.s32 1, %v73_v50 }
  0x34   :  { %697 = vset.pattern.permute.xlu0 %v817_v2  ;;  %v728_v34 = vld [vmem:[#allocation3 + $0xa4] ss:$8 sps:$4 sm:$0xff]   ;;  %v730_v37 = vld [vmem:[#allocation3 + $0xa0] ss:$8 sps:$4 sm:$0xff]   ;;  %v731_v38 = vld [vmem:[#allocation3 + $0xb4] ss:$8 sps:$4 sm:$0xff]  }
  0x35   :  { %370 = vmatpush1.bf16.msra.mxu0 %v706_v10  ;;  %666 = vmatpush3.bf16.msra.mxu1 %v749_v23  ;;  %v755_v35 = vld [vmem:[#allocation5 + $0x20] sm:$0xff]   ;;  %v757_v39 = vld [vmem:[#allocation5 + $0x28] sm:$0xff]   ;;  %v733_v40 = vld [vmem:[#allocation3 + $0xb0] ss:$8 sps:$4 sm:$0xff]   ;;  %v115_v59 = vsub.s32 5, %v73_v50 }
  0x36   :  { %371 = vmatprep.subr.bf16.mxu0 %v707_v11  ;;  %667 = vmatprep.subr.bf16.mxu1 %v750_v24  ;;  %v734_v41 = vld [vmem:[#allocation3 + $0xc4] ss:$8 sps:$4 sm:$0xff]   ;;  %v736_v42 = vld [vmem:[#allocation3 + $0xc0] ss:$8 sps:$4 sm:$0xff]   ;;  %v737_v43 = vld [vmem:[#allocation3 + $0xd4] ss:$8 sps:$4 sm:$0xff]  }
  0x37   :  { %v739_v44 = vld [vmem:[#allocation3 + $0xd0] ss:$8 sps:$4 sm:$0xff]   ;;  %v740_v45 = vld [vmem:[#allocation3 + $0xe4] ss:$8 sps:$4 sm:$0xff]   ;;  %v742_v46 = vld [vmem:[#allocation3 + $0xe0] ss:$8 sps:$4 sm:$0xff]  }
  0x38   :  { %v743_v47 = vld [vmem:[#allocation3 + $0xf4] ss:$8 sps:$4 sm:$0xff]   ;;  %v745_v48 = vld [vmem:[#allocation3 + $0xf0] ss:$8 sps:$4 sm:$0xff]  }
  0x39   :  { %372 = vmatpush1.bf16.msra.mxu0 %v709_v12  ;;  %668 = vmatpush3.bf16.msra.mxu1 %v751_v27  ;;  %v64_v53 = vld [vmem:[%s918_s1] sm:$0x77] }
  0x3a   :  { %373 = vmatprep.subr.bf16.mxu0 %v710_v13  ;;  %669 = vmatprep.subr.bf16.mxu1 %v752_v28  ;;  %v75_v56 = vrot.slane %v64_v53, %v74_v51  ;;  %v79_v57 = vrot.slane %v64_v53, %v78_v52  ;;  %v138_v60 = vrot.slane %v64_v53, %v137_v54  ;;  %v65_v62 = vld [vmem:[%s919_s2] sm:$0x3]  ;;  %v758_v28 = vld [vmem:[#allocation5 + $0x70] sm:$0xff]  }
  0x3b   :  { %v142_v61 = vrot.slane %v64_v53, %v141_v55  ;;  %v112_v1 = vrot.slane %v64_v53, %v99_v58  ;;  %v116_v2 = vrot.slane %v64_v53, %v115_v59  ;;  %v96_v4 = vrot.slane %v65_v62, %v74_v51  ;;  %v661_v52 = vld [vmem:[%s924_s7] ss:$0 sm:$0xff] }
  0x3c   :  { %v85_v63 = vrot.slane %v75_v56, %v74_v51  ;;  %v89_v0 = vrot.slane %v79_v57, %v74_v51  ;;  %v100_v5 = vrot.slane %v65_v62, %v99_v58  ;;  %v148_v6 = vrot.slane %v138_v60, %v137_v54  ;;  %v662_v55 = vld [vmem:[#allocation2] ss:$0 sm:$0xff] }
  0x3d   :  { %374 = vmatpush1.bf16.msra.mxu0 %v712_v14  ;;  %670 = vmatpush3.bf16.msra.mxu1 %v753_v32  ;;  %v152_v7 = vrot.slane %v142_v61, %v137_v54  ;;  %v122_v10 = vrot.slane %v112_v1, %v99_v58  ;;  %v126_v11 = vrot.slane %v116_v2, %v99_v58  ;;  %v193_v32 = vld [vmem:[%s921_s4] sm:$0x3] }
  0x3e   :  { %375 = vmatprep.subr.bf16.mxu0 %v713_v15  ;;  %671 = vmatprep.subr.bf16.mxu1 %v754_v33  ;;  %v198_v33 = vrot.slane %v193_v32, %v74_v51 }
  0x41   :  { %376 = vmatpush1.bf16.msra.mxu0 %v715_v16  ;;  %672 = vmatpush3.bf16.msra.mxu1 %v755_v35 }
  0x42   :  { %377 = vmatprep.subr.bf16.mxu0 %v716_v17  ;;  %673 = vmatprep.subr.bf16.mxu1 %v756_v36 }
  0x45   :  { %378 = vmatpush1.bf16.msra.mxu0 %v718_v18  ;;  %674 = vmatpush3.bf16.msra.mxu1 %v757_v39 }
  0x46   :  { %379 = vmatprep.subr.bf16.mxu0 %v719_v19  ;;  %675 = vmatprep.subr.bf16.mxu1 %v758_v28 }
  0x49   :  { %380 = vmatpush1.bf16.msra.mxu0 %v721_v25 }
  0x4a   :  { %381 = vmatprep.subr.bf16.mxu0 %v722_v26 }
  0x4d   :  { %382 = vmatpush1.bf16.msra.mxu0 %v724_v29  ;;  %v759_v29 = vld [vmem:[#allocation5 + $0x30] sm:$0xff]  }
  0x4e   :  { %383 = vmatprep.subr.bf16.mxu0 %v725_v30  ;;  %676 = vmatpush3.bf16.msra.mxu1 %v759_v29  ;;  %v760_v30 = vld [vmem:[#allocation5 + $0x78] sm:$0xff]  }
  0x4f   :  { %677 = vmatprep.subr.bf16.mxu1 %v760_v30 }
  0x51   :  { %384 = vmatpush1.bf16.msra.mxu0 %v727_v31  ;;  %v761_v31 = vld [vmem:[#allocation5 + $0x38] sm:$0xff]  }
  0x52   :  { %385 = vmatprep.subr.bf16.mxu0 %v728_v34  ;;  %678 = vmatpush3.bf16.msra.mxu1 %v761_v31  ;;  %v202_v34 = vrot.slane %v193_v32, %v99_v58 }
  0x55   :  { %386 = vmatpush1.bf16.msra.mxu0 %v730_v37 }
  0x56   :  { %387 = vmatprep.subr.bf16.mxu0 %v731_v38 }
  0x59   :  { %388 = vmatpush1.bf16.msra.mxu0 %v733_v40 }
  0x5a   :  { %389 = vmatprep.subr.bf16.mxu0 %v734_v41 }
  0x5d   :  { %390 = vmatpush1.bf16.msra.mxu0 %v736_v42 }
  0x5e   :  { %391 = vmatprep.subr.bf16.mxu0 %v737_v43 }
  0x61   :  { %392 = vmatpush1.bf16.msra.mxu0 %v739_v44 }
  0x62   :  { %393 = vmatprep.subr.bf16.mxu0 %v740_v45 }
  0x65   :  { %394 = vmatpush1.bf16.msra.mxu0 %v742_v46  ;;  %v644_v46 = vld [vmem:[%s923_s6] ss:$0 sm:$0xff] }
  0x66   :  { %395 = vmatprep.subr.bf16.mxu0 %v743_v47 }
  0x69   :  { %396 = vmatpush1.bf16.msra.mxu0 %v745_v48 }
  0xaa   :  { %v69_v3 = vpop.permute.xlu0 %68  ;;  %v133_v12 = vpop.permute.xlu1 %132 }
  0xab   :  { %v90_v8 = vmul.f32 %v85_v63, %v69_v3  ;;  %v91_v9 = vmul.f32 %v89_v0, %v69_v3  ;;  %v153_v14 = vmul.f32 %v148_v6, %v133_v12  ;;  %v154_v15 = vmul.f32 %v152_v7, %v133_v12 }
  0xad   :  { %v103_v16 = vadd.f32 %v96_v4, %v90_v8  ;;  %v104_v17 = vadd.f32 %v100_v5, %v91_v9 }
  0xaf   :  { %v107_v13 = vpop.permute.xlu0 %106 }
  0xb0   :  { %v127_v18 = vmul.f32 %v122_v10, %v107_v13  ;;  %v128_v19 = vmul.f32 %v126_v11, %v107_v13 }
  0xb2   :  { %v129_v20 = vadd.f32 %v127_v18, %v103_v16  ;;  %v130_v21 = vadd.f32 %v128_v19, %v104_v17 }
  0xb4   :  { %v155_v22 = vadd.f32 %v153_v14, %v129_v20  ;;  %v156_v23 = vadd.f32 %v154_v15, %v130_v21 }
  0xb6   :  { %v157_v24 = vmax.f32 %v155_v22, 0.0  ;;  %v158_v25 = vmax.f32 %v156_v23, 0.0 }
  0xb8   :  { %v192_v26 = vpack.c.bf16 %v158_v25, %v158_v25  ;;  %v191_v27 = vpack.c.bf16 %v157_v24, %v157_v24 }
  0xba   :  { %397 = vmatprep.mubr.bf16.mxu0 %v192_v26 }
  0xbb   :  { %398 = vmatmul.mubr.bf16.vlgmr.msra.gmra.mrb[0].mxu0 %v191_v27 }
 0x18e   :  { %v399_v35 = vpop.f32.mrb[0].mxu0 }
 0x18f   :  { %v400_v36 = vadd.f32 %v399_v35, %v198_v33  ;;  %v401_v37 = vpop.f32.mrb[1].mxu0 }
 0x190   :  { %v402_v38 = vadd.f32 %v401_v37, %v202_v34  ;;  %v403_v39 = vpop.f32.mrb[2].mxu0 }
 0x191   :  { %v406_v40 = vmax.f32 %v400_v36, 0.0  ;;  %v404_v41 = vpop.f32.mrb[3].mxu0 }
 0x192   :  { %v407_v42 = vmax.f32 %v402_v38, 0.0 }
 0x193   :  { %v440_v44 = vpack.c.bf16 %v406_v40, %v406_v40 }
 0x194   :  { %v441_v43 = vpack.c.bf16 %v407_v42, %v407_v42 }
 0x196   :  { %577 = vmatprep.mubr.bf16.mxu1 %v441_v43 }
 0x197   :  { %578 = vmatmul.mubr.bf16.vlgmr.msra.gmra.mrb[0].mxu1 %v440_v44 }
 0x26a   :  { %v679_v45 = vpop.f32.mrb[0].mxu1 }
 0x26b   :  { %v680_v47 = vpop.f32.mrb[1].mxu1 }
 0x26c   :  { %v681_v48 = vadd.f32 %v680_v47, %v679_v45  ;;  %v682_v49 = vpop.f32.mrb[2].mxu1 }
 0x26d   :  { %v683_v50 = vpop.f32.mrb[3].mxu1 }
 0x26e   :  { %v580_v51 = vadd.f32 %v681_v48, %v644_v46 }
 0x270   :  { %v585_v53 = vmax.f32 %v580_v51, 0.0 }
 0x272   :  { %v593_v54 = vmul.f32 %v661_v52, %v585_v53 }
 0x274   :  { %594 = vadd.xlane.f32.xlu1 %v593_v54 }
 0x301   :  { %v595_v56 = vpop.xlane.xlu1 %594 }
 0x302   :  { %v603_v57 = vadd.f32 %v662_v55, %v595_v56 }
 0x304   :  { %605 = vst.msk [vmem:[%s926_s9] sm:$0xff] %vm604_vm0, %v603_v57 }
 0x305   :  { %610 = vsyncpa [#allocation4], 1 }
 0x306   :  { %611 = vsyncpa [#allocation6], 1 }

</bundles_post_ra>
